<compile_context>
chip_gen: v7x
topology: tpu7x:2x2x1
jax: 0.10.0
libtpu: 0.0.40
codegen_flags: <defaults>
</compile_context>

<pallas_src>
import jax
import jax.numpy as jnp
from jax.experimental import pallas as pl
from jax.experimental.pallas import tpu as pltpu

EPS = 1e-5
# DROPOUT = 0.05 -> identity in eval mode; nothing to compute.


# ----------------------------- Pallas kernels ------------------------------

def _conv_pool_bn_relu_kernel(p00_ref, p01_ref, p10_ref, p11_ref,
                              w_ref, scale_ref, shift_ref, o_ref):
    """Fused convblock: Conv3x3 -> MaxPool(2,2) -> BN -> ReLU.

    Each p*_ref holds the im2col rows of one 2x2 pooling offset, so the
    elementwise max of the four matmul results IS the max-pooled conv output.
    BN scale is applied after the max (exact for any gamma sign)."""
    w = w_ref[...]                                            # (K, Co) bf16, reused 4x
    a = jnp.dot(p00_ref[...], w, preferred_element_type=jnp.float32)
    b = jnp.dot(p01_ref[...], w, preferred_element_type=jnp.float32)
    c = jnp.dot(p10_ref[...], w, preferred_element_type=jnp.float32)
    d = jnp.dot(p11_ref[...], w, preferred_element_type=jnp.float32)
    m = jnp.maximum(jnp.maximum(a, b), jnp.maximum(c, d))
    o_ref[...] = jnp.maximum(m * scale_ref[...] + shift_ref[...], 0.0)


def _conv_bn_relu_kernel(p_ref, w_ref, shift_ref, o_ref):
    """Conv3x3 -> BN -> ReLU with the BN scale pre-folded into W (exact at eval)."""
    acc = jnp.dot(p_ref[...], w_ref[...], preferred_element_type=jnp.float32)
    o_ref[...] = jnp.maximum(acc + shift_ref[...], 0.0).astype(o_ref.dtype)


def _conv_bn_relu_add_kernel(p_ref, w_ref, shift_ref, skip_ref, o_ref):
    """Final resblock conv fused with the SkipBlock residual add (skip aliased to out)."""
    acc = jnp.dot(p_ref[...], w_ref[...], preferred_element_type=jnp.float32)
    y = jnp.maximum(acc + shift_ref[...], 0.0)
    o_ref[...] = skip_ref[...] + y


# ----------------------------- tiling helpers -------------------------------

def _round_up(x, m):
    return -(-x // m) * m


def _tile_rows(m):
    # Sublane-aligned (mult of 16, safe for bf16 tiles), >=2 grid steps when
    # possible (v7x has 2 TensorCores), capped at 256 rows so double-buffered
    # blocks stay well inside v7x's 64 MiB VMEM.
    tm = min(256, _round_up(max(16, pl.cdiv(m, 2)), 16))
    return tm, _round_up(m, tm)


def _pad_rows(a, mp):
    m = a.shape[0]
    return a if m == mp else jnp.pad(a, ((0, mp - m), (0, 0)))


# ----------------------------- Pallas wrappers ------------------------------

def conv_pool_bn_relu(p4, wmat, scale, shift, out_rows):
    """p4: four (M, K) bf16 patch matrices (one per 2x2 pool offset)."""
    m, k = p4[0].shape
    co = wmat.shape[1]
    tm, mp = _tile_rows(m)
    p4 = [_pad_rows(p, mp) for p in p4]
    row_spec = pl.BlockSpec((tm, k), lambda i: (i, 0))
    vec_spec = pl.BlockSpec((1, co), lambda i: (0, 0))
    cost = pl.CostEstimate(flops=8 * mp * k * co, transcendentals=0,
                           bytes_accessed=4 * mp * k * 2 + k * co * 2 + mp * co * 4)
    out = pl.pallas_call(
        _conv_pool_bn_relu_kernel,
        out_shape=jax.ShapeDtypeStruct((mp, co), jnp.float32),
        grid=(mp // tm,),
        in_specs=[row_spec, row_spec, row_spec, row_spec,
                  pl.BlockSpec((k, co), lambda i: (0, 0)), vec_spec, vec_spec],
        out_specs=pl.BlockSpec((tm, co), lambda i: (i, 0)),
        compiler_params=pltpu.CompilerParams(dimension_semantics=("parallel",)),
        cost_estimate=cost,
    )(*p4, wmat, scale, shift)
    return out[:out_rows] if out_rows != mp else out


def conv_bn_relu(patches, wmat, shift, skip=None, out_dtype=jnp.float32):
    m, k = patches.shape
    co = wmat.shape[1]
    tm, mp = _tile_rows(m)
    patches = _pad_rows(patches, mp)
    row_spec = pl.BlockSpec((tm, k), lambda i: (i, 0))
    out_spec = pl.BlockSpec((tm, co), lambda i: (i, 0))
    in_specs = [row_spec,
                pl.BlockSpec((k, co), lambda i: (0, 0)),
                pl.BlockSpec((1, co), lambda i: (0, 0))]
    args = [patches, wmat, shift]
    kernel = _conv_bn_relu_kernel
    io_alias = {}
    if skip is not None:
        skip = _pad_rows(skip, mp)
        in_specs.append(out_spec)
        args.append(skip)
        kernel = _conv_bn_relu_add_kernel
        io_alias = {3: 0}                  # write the result into the skip buffer
        out_dtype = skip.dtype
    cost = pl.CostEstimate(flops=2 * mp * k * co, transcendentals=0,
                           bytes_accessed=mp * k * 2 + k * co * 2 + mp * co * 4)
    out = pl.pallas_call(
        kernel,
        out_shape=jax.ShapeDtypeStruct((mp, co), out_dtype),
        grid=(mp // tm,),
        in_specs=in_specs,
        out_specs=out_spec,
        input_output_aliases=io_alias,
        compiler_params=pltpu.CompilerParams(dimension_semantics=("parallel",)),
        cost_estimate=cost,
    )(*args)
    return out[:m] if m != mp else out


# ------------------------------- glue (XLA) ---------------------------------

def _edge_pad(x_nhwc):
    return jnp.pad(x_nhwc, ((0, 0), (1, 1), (1, 1), (0, 0)), mode='edge')


def _im2col(x_nhwc):
    # replicate pad + 3x3 patches, (kh, kw, ci) minor ordering; bf16 MXU operands.
    x = x_nhwc.astype(jnp.bfloat16)
    n, h, w, c = x.shape
    xp = _edge_pad(x)
    cols = [xp[:, kh:kh + h, kw:kw + w, :] for kh in range(3) for kw in range(3)]
    return jnp.concatenate(cols, axis=-1).reshape(n * h * w, 9 * c)


def _pool_offset_patches(xp, dh, dw, hp, wp):
    # im2col rows for conv output positions (2i+dh, 2j+dw): one 2x2 pool offset.
    n, _, _, c = xp.shape
    cols = []
    for kh in range(3):
        for kw in range(3):
            r0, c0 = dh + kh, dw + kw
            cols.append(xp[:, r0:r0 + 2 * hp - 1:2, c0:c0 + 2 * wp - 1:2, :])
    return jnp.concatenate(cols, axis=-1).reshape(n * hp * wp, 9 * c)


def _wmat(w_oihw, scale=None):
    # (Co,Ci,3,3) -> (9*Ci, Co) in (kh, kw, ci) order; optionally fold BN scale
    # into the weights (exact affine fold in eval mode). bf16 MXU operand.
    w = w_oihw
    if scale is not None:
        w = w * scale[:, None, None, None]
    co, ci, kh, kw = w.shape
    return jnp.transpose(w, (2, 3, 1, 0)).reshape(kh * kw * ci, co).astype(jnp.bfloat16)


def _bn_fold(bn):
    scale = (bn['gamma'] / jnp.sqrt(bn['var'] + EPS)).astype(jnp.float32)
    shift = (bn['beta'] - bn['mean'] * scale).astype(jnp.float32)
    return scale, shift


@jax.jit
def skip_block_forward(x_nchw, p):
    n, ci, h, w = x_nchw.shape
    assert h % 2 == 0 and w % 2 == 0, "MaxPool2d(2,2) needs even H and W"
    co = p['w1'].shape[0]
    hp, wp = h // 2, w // 2
    m = n * hp * wp

    x = jnp.transpose(x_nchw, (0, 2, 3, 1)).astype(jnp.bfloat16)     # NHWC, MXU dtype
    xp = _edge_pad(x)

    # convblock: conv -> maxpool -> BN -> relu, one fused kernel (no full-res HBM trip)
    s1, t1 = _bn_fold(p['bn1'])
    p4 = [_pool_offset_patches(xp, dh, dw, hp, wp) for dh in (0, 1) for dw in (0, 1)]
    x_skip = conv_pool_bn_relu(p4, _wmat(p['w1']),
                               s1.reshape(1, -1), t1.reshape(1, -1), m)   # (M, Co) f32

    # resblock conv #1: BN scale folded into weights, bf16 output (feeds next matmul only)
    s2, t2 = _bn_fold(p['bn2'])
    r1 = conv_bn_relu(_im2col(x_skip.reshape(n, hp, wp, co)),
                      _wmat(p['w2'], s2), t2.reshape(1, -1),
                      out_dtype=jnp.bfloat16)

    # resblock conv #2 fused with the SkipBlock residual add (skip aliased to output)
    s3, t3 = _bn_fold(p['bn3'])
    out = conv_bn_relu(_im2col(r1.reshape(n, hp, wp, co)),
                       _wmat(p['w3'], s3), t3.reshape(1, -1),
                       skip=x_skip)

    return jnp.transpose(out.reshape(n, hp, wp, co), (0, 3, 1, 2))    # back to NCHW


# ------------------------- deterministic parameters -------------------------

def init_params(key, ci, co):
    ks = jax.random.split(key, 6)

    def bn(k):
        k1, k2, k3, k4 = jax.random.split(k, 4)
        return dict(gamma=jax.random.uniform(k1, (co,), minval=0.5, maxval=1.5),
                    beta=jax.random.normal(k2, (co,)) * 0.1,
                    mean=jax.random.normal(k3, (co,)) * 0.1,
                    var=jax.random.uniform(k4, (co,), minval=0.5, maxval=1.5))

    return dict(
        w1=jax.random.normal(ks[0], (co, ci, 3, 3)) * 0.2,
        w2=jax.random.normal(ks[1], (co, co, 3, 3)) * 0.2,
        w3=jax.random.normal(ks[2], (co, co, 3, 3)) * 0.2,
        bn1=bn(ks[3]), bn2=bn(ks[4]), bn3=bn(ks[5]),
    )


# --------------------------- reference (matched precision) -------------------
# Structurally the plain PyTorch eval-mode composition (conv -> pool -> BN -> relu,
# then two conv -> BN -> relu, then skip add).  Conv operands are rounded to bf16
# exactly as the kernels do (bf16 MXU inputs, f32 accumulation), and the resblock
# BN scales are folded into the weights before rounding -- an exact affine identity
# at eval time -- so kernel vs. reference differ only by f32 accumulation order.

def ref_forward(x, p):
    s1, t1 = _bn_fold(p['bn1'])
    s2, t2 = _bn_fold(p['bn2'])
    s3, t3 = _bn_fold(p['bn3'])

    def conv(x_nchw, w_oihw):
        xq = x_nchw.astype(jnp.bfloat16).astype(jnp.float32)
        wq = w_oihw.astype(jnp.bfloat16).astype(jnp.float32)
        xp = jnp.pad(xq, ((0, 0), (0, 0), (1, 1), (1, 1)), mode='edge')
        return jax.lax.conv_general_dilated(
            xp, wq, (1, 1), 'VALID', dimension_numbers=('NCHW', 'OIHW', 'NCHW'))

    c1 = conv(x, p['w1'])
    n, co, h, w = c1.shape
    pooled = c1.reshape(n, co, h // 2, 2, w // 2, 2).max(axis=(3, 5))
    xs = jnp.maximum(pooled * s1[None, :, None, None] + t1[None, :, None, None], 0.0)
    r = jnp.maximum(conv(xs, p['w2'] * s2[:, None, None, None])
                    + t2[None, :, None, None], 0.0)
    r = jnp.maximum(conv(r, p['w3'] * s3[:, None, None, None])
                    + t3[None, :, None, None], 0.0)
    return xs + r


# ----------------------------------- main ------------------------------------

if __name__ == "__main__":
    key = jax.random.PRNGKey(0)
    kx, kp = jax.random.split(key)
    ci, co = 4, 8
    x = jax.random.normal(kx, (2, ci, 16, 16), dtype=jnp.float32)
    params = init_params(kp, ci, co)

    out = jax.block_until_ready(skip_block_forward(x, params))
    ref = ref_forward(x, params)

    assert out.shape == ref.shape == (2, co, 8, 8)
    # bf16 operand rounding is matched between kernel and reference; remaining
    # differences are f32 accumulation order (MXU vs XLA conv) and rare ulp-level
    # tie-breaks at max/relu/rounding boundaries -> 1e-2 is a tight-but-safe bound.
    assert jnp.allclose(out, ref, atol=1e-2, rtol=1e-2), "mismatch vs reference"

    print("KERNEL_OK")
</pallas_src>

<mosaic_0001>
module attributes {stable_mosaic.version = 11 : i64} {
  func.func @_conv_pool_bn_relu_kernel(%arg0: i32, %arg1: memref<64x36xbf16, #tpu.memory_space<vmem>>, %arg2: memref<64x36xbf16, #tpu.memory_space<vmem>>, %arg3: memref<64x36xbf16, #tpu.memory_space<vmem>>, %arg4: memref<64x36xbf16, #tpu.memory_space<vmem>>, %arg5: memref<36x8xbf16, #tpu.memory_space<vmem>>, %arg6: memref<1x8xf32, #tpu.memory_space<vmem>>, %arg7: memref<1x8xf32, #tpu.memory_space<vmem>>, %arg8: memref<64x8xf32, #tpu.memory_space<vmem>>) attributes {dimension_semantics = [#tpu.dimension_semantics<parallel>], iteration_bounds = array<i64: 2>, scalar_prefetch = 0 : i64, scratch_operands = 0 : i64, tpu.core_type = #tpu.core_type<tc>, window_params = [{transform_indices = @transform_0, window_bounds = array<i64: 64, 36>}, {transform_indices = @transform_1, window_bounds = array<i64: 64, 36>}, {transform_indices = @transform_2, window_bounds = array<i64: 64, 36>}, {transform_indices = @transform_3, window_bounds = array<i64: 64, 36>}, {pipeline_mode = #tpu.pipeline_mode<synchronous>, transform_indices = @transform_4, window_bounds = array<i64: 36, 8>}, {pipeline_mode = #tpu.pipeline_mode<synchronous>, transform_indices = @transform_5, window_bounds = array<i64: 1, 8>}, {pipeline_mode = #tpu.pipeline_mode<synchronous>, transform_indices = @transform_6, window_bounds = array<i64: 1, 8>}, {transform_indices = @transform_7, window_bounds = array<i64: 64, 8>}]} {
    %c0 = arith.constant 0 : index
    %c0_0 = arith.constant 0 : index
    %0 = vector.load %arg5[%c0, %c0_0] : memref<36x8xbf16, #tpu.memory_space<vmem>>, vector<36x8xbf16>
    %c0_1 = arith.constant 0 : index
    %c0_2 = arith.constant 0 : index
    %1 = vector.load %arg1[%c0_1, %c0_2] : memref<64x36xbf16, #tpu.memory_space<vmem>>, vector<64x36xbf16>
    %cst = arith.constant dense<0.000000e+00> : vector<64x8xf32>
    %2 = tpu.matmul %1, %0, %cst {dimension_numbers = #tpu.dot_dimension_numbers<[1], [0], [0], [1], [0, 0, 1, 1], [], []>} : vector<64x36xbf16>, vector<36x8xbf16>, vector<64x8xf32> -> vector<64x8xf32>
    %c0_3 = arith.constant 0 : index
    %c0_4 = arith.constant 0 : index
    %3 = vector.load %arg2[%c0_3, %c0_4] : memref<64x36xbf16, #tpu.memory_space<vmem>>, vector<64x36xbf16>
    %cst_5 = arith.constant dense<0.000000e+00> : vector<64x8xf32>
    %4 = tpu.matmul %3, %0, %cst_5 {dimension_numbers = #tpu.dot_dimension_numbers<[1], [0], [0], [1], [0, 0, 1, 1], [], []>} : vector<64x36xbf16>, vector<36x8xbf16>, vector<64x8xf32> -> vector<64x8xf32>
    %c0_6 = arith.constant 0 : index
    %c0_7 = arith.constant 0 : index
    %5 = vector.load %arg3[%c0_6, %c0_7] : memref<64x36xbf16, #tpu.memory_space<vmem>>, vector<64x36xbf16>
    %cst_8 = arith.constant dense<0.000000e+00> : vector<64x8xf32>
    %6 = tpu.matmul %5, %0, %cst_8 {dimension_numbers = #tpu.dot_dimension_numbers<[1], [0], [0], [1], [0, 0, 1, 1], [], []>} : vector<64x36xbf16>, vector<36x8xbf16>, vector<64x8xf32> -> vector<64x8xf32>
    %c0_9 = arith.constant 0 : index
    %c0_10 = arith.constant 0 : index
    %7 = vector.load %arg4[%c0_9, %c0_10] : memref<64x36xbf16, #tpu.memory_space<vmem>>, vector<64x36xbf16>
    %cst_11 = arith.constant dense<0.000000e+00> : vector<64x8xf32>
    %8 = tpu.matmul %7, %0, %cst_11 {dimension_numbers = #tpu.dot_dimension_numbers<[1], [0], [0], [1], [0, 0, 1, 1], [], []>} : vector<64x36xbf16>, vector<36x8xbf16>, vector<64x8xf32> -> vector<64x8xf32>
    %9 = arith.maximumf %2, %4 : vector<64x8xf32>
    %10 = arith.maximumf %6, %8 : vector<64x8xf32>
    %11 = arith.maximumf %9, %10 : vector<64x8xf32>
    %c0_12 = arith.constant 0 : index
    %c0_13 = arith.constant 0 : index
    %12 = vector.load %arg6[%c0_12, %c0_13] : memref<1x8xf32, #tpu.memory_space<vmem>>, vector<1x8xf32>
    %13 = vector.broadcast %12 : vector<1x8xf32> to vector<64x8xf32>
    %14 = arith.mulf %11, %13 : vector<64x8xf32>
    %c0_14 = arith.constant 0 : index
    %c0_15 = arith.constant 0 : index
    %15 = vector.load %arg7[%c0_14, %c0_15] : memref<1x8xf32, #tpu.memory_space<vmem>>, vector<1x8xf32>
    %16 = vector.broadcast %15 : vector<1x8xf32> to vector<64x8xf32>
    %17 = arith.addf %14, %16 : vector<64x8xf32>
    %cst_16 = arith.constant 0.000000e+00 : f32
    %18 = vector.broadcast %cst_16 : f32 to vector<64x8xf32>
    %19 = arith.maximumf %17, %18 : vector<64x8xf32>
    %c0_17 = arith.constant 0 : index
    %c0_18 = arith.constant 0 : index
    %20 = vector.load %arg8[%c0_17, %c0_18] : memref<64x8xf32, #tpu.memory_space<vmem>>, vector<64x8xf32>
    tpu.vector_store %arg8[%c0_17, %c0_18], %19 {strides = array<i32>} : memref<64x8xf32, #tpu.memory_space<vmem>>, vector<64x8xf32>,
    return
  }
  func.func @transform_0(%arg0: i32) -> (i32, i32) {
    %c0_i32 = arith.constant 0 : i32
    %c0_i32_0 = arith.constant 0 : i32
    return %arg0, %c0_i32 : i32, i32
  }
  func.func @transform_1(%arg0: i32) -> (i32, i32) {
    %c0_i32 = arith.constant 0 : i32
    %c0_i32_0 = arith.constant 0 : i32
    return %arg0, %c0_i32 : i32, i32
  }
  func.func @transform_2(%arg0: i32) -> (i32, i32) {
    %c0_i32 = arith.constant 0 : i32
    %c0_i32_0 = arith.constant 0 : i32
    return %arg0, %c0_i32 : i32, i32
  }
  func.func @transform_3(%arg0: i32) -> (i32, i32) {
    %c0_i32 = arith.constant 0 : i32
    %c0_i32_0 = arith.constant 0 : i32
    return %arg0, %c0_i32 : i32, i32
  }
  func.func @transform_4(%arg0: i32) -> (i32, i32) {
    %c0_i32 = arith.constant 0 : i32
    %c0_i32_0 = arith.constant 0 : i32
    %c0_i32_1 = arith.constant 0 : i32
    return %c0_i32, %c0_i32_0 : i32, i32
  }
  func.func @transform_5(%arg0: i32) -> (i32, i32) {
    %c0_i32 = arith.constant 0 : i32
    %c0_i32_0 = arith.constant 0 : i32
    %c0_i32_1 = arith.constant 0 : i32
    return %c0_i32, %c0_i32_0 : i32, i32
  }
  func.func @transform_6(%arg0: i32) -> (i32, i32) {
    %c0_i32 = arith.constant 0 : i32
    %c0_i32_0 = arith.constant 0 : i32
    %c0_i32_1 = arith.constant 0 : i32
    return %c0_i32, %c0_i32_0 : i32, i32
  }
  func.func @transform_7(%arg0: i32) -> (i32, i32) {
    %c0_i32 = arith.constant 0 : i32
    %c0_i32_0 = arith.constant 0 : i32
    return %arg0, %c0_i32 : i32, i32
  }
}

module attributes {stable_mosaic.version = 11 : i64} {
  func.func @_conv_bn_relu_kernel(%arg0: i32, %arg1: memref<64x72xbf16, #tpu.memory_space<vmem>>, %arg2: memref<72x8xbf16, #tpu.memory_space<vmem>>, %arg3: memref<1x8xf32, #tpu.memory_space<vmem>>, %arg4: memref<64x8xbf16, #tpu.memory_space<vmem>>) attributes {dimension_semantics = [#tpu.dimension_semantics<parallel>], iteration_bounds = array<i64: 2>, scalar_prefetch = 0 : i64, scratch_operands = 0 : i64, tpu.core_type = #tpu.core_type<tc>, window_params = [{transform_indices = @transform_0, window_bounds = array<i64: 64, 72>}, {pipeline_mode = #tpu.pipeline_mode<synchronous>, transform_indices = @transform_1, window_bounds = array<i64: 72, 8>}, {pipeline_mode = #tpu.pipeline_mode<synchronous>, transform_indices = @transform_2, window_bounds = array<i64: 1, 8>}, {transform_indices = @transform_3, window_bounds = array<i64: 64, 8>}]} {
    %c0 = arith.constant 0 : index
    %c0_0 = arith.constant 0 : index
    %0 = vector.load %arg1[%c0, %c0_0] : memref<64x72xbf16, #tpu.memory_space<vmem>>, vector<64x72xbf16>
    %c0_1 = arith.constant 0 : index
    %c0_2 = arith.constant 0 : index
    %1 = vector.load %arg2[%c0_1, %c0_2] : memref<72x8xbf16, #tpu.memory_space<vmem>>, vector<72x8xbf16>
    %cst = arith.constant dense<0.000000e+00> : vector<64x8xf32>
    %2 = tpu.matmul %0, %1, %cst {dimension_numbers = #tpu.dot_dimension_numbers<[1], [0], [0], [1], [0, 0, 1, 1], [], []>} : vector<64x72xbf16>, vector<72x8xbf16>, vector<64x8xf32> -> vector<64x8xf32>
    %c0_3 = arith.constant 0 : index
    %c0_4 = arith.constant 0 : index
    %3 = vector.load %arg3[%c0_3, %c0_4] : memref<1x8xf32, #tpu.memory_space<vmem>>, vector<1x8xf32>
    %4 = vector.broadcast %3 : vector<1x8xf32> to vector<64x8xf32>
    %5 = arith.addf %2, %4 : vector<64x8xf32>
    %cst_5 = arith.constant 0.000000e+00 : f32
    %6 = vector.broadcast %cst_5 : f32 to vector<64x8xf32>
    %7 = arith.maximumf %5, %6 : vector<64x8xf32>
    %8 = arith.truncf %7 : vector<64x8xf32> to vector<64x8xbf16>
    %c0_6 = arith.constant 0 : index
    %c0_7 = arith.constant 0 : index
    %9 = vector.load %arg4[%c0_6, %c0_7] : memref<64x8xbf16, #tpu.memory_space<vmem>>, vector<64x8xbf16>
    tpu.vector_store %arg4[%c0_6, %c0_7], %8 {strides = array<i32>} : memref<64x8xbf16, #tpu.memory_space<vmem>>, vector<64x8xbf16>,
    return
  }
  func.func @transform_0(%arg0: i32) -> (i32, i32) {
    %c0_i32 = arith.constant 0 : i32
    %c0_i32_0 = arith.constant 0 : i32
    return %arg0, %c0_i32 : i32, i32
  }
  func.func @transform_1(%arg0: i32) -> (i32, i32) {
    %c0_i32 = arith.constant 0 : i32
    %c0_i32_0 = arith.constant 0 : i32
    %c0_i32_1 = arith.constant 0 : i32
    return %c0_i32, %c0_i32_0 : i32, i32
  }
  func.func @transform_2(%arg0: i32) -> (i32, i32) {
    %c0_i32 = arith.constant 0 : i32
    %c0_i32_0 = arith.constant 0 : i32
    %c0_i32_1 = arith.constant 0 : i32
    return %c0_i32, %c0_i32_0 : i32, i32
  }
  func.func @transform_3(%arg0: i32) -> (i32, i32) {
    %c0_i32 = arith.constant 0 : i32
    %c0_i32_0 = arith.constant 0 : i32
    return %arg0, %c0_i32 : i32, i32
  }
}

module attributes {stable_mosaic.version = 11 : i64} {
  func.func @_conv_bn_relu_add_kernel(%arg0: i32, %arg1: memref<64x72xbf16, #tpu.memory_space<vmem>>, %arg2: memref<72x8xbf16, #tpu.memory_space<vmem>>, %arg3: memref<1x8xf32, #tpu.memory_space<vmem>>, %arg4: memref<64x8xf32, #tpu.memory_space<vmem>>, %arg5: memref<64x8xf32, #tpu.memory_space<vmem>>) attributes {dimension_semantics = [#tpu.dimension_semantics<parallel>], iteration_bounds = array<i64: 2>, scalar_prefetch = 0 : i64, scratch_operands = 0 : i64, tpu.core_type = #tpu.core_type<tc>, window_params = [{transform_indices = @transform_0, window_bounds = array<i64: 64, 72>}, {pipeline_mode = #tpu.pipeline_mode<synchronous>, transform_indices = @transform_1, window_bounds = array<i64: 72, 8>}, {pipeline_mode = #tpu.pipeline_mode<synchronous>, transform_indices = @transform_2, window_bounds = array<i64: 1, 8>}, {transform_indices = @transform_3, window_bounds = array<i64: 64, 8>}, {transform_indices = @transform_4, window_bounds = array<i64: 64, 8>}]} {
    %c0 = arith.constant 0 : index
    %c0_0 = arith.constant 0 : index
    %0 = vector.load %arg1[%c0, %c0_0] : memref<64x72xbf16, #tpu.memory_space<vmem>>, vector<64x72xbf16>
    %c0_1 = arith.constant 0 : index
    %c0_2 = arith.constant 0 : index
    %1 = vector.load %arg2[%c0_1, %c0_2] : memref<72x8xbf16, #tpu.memory_space<vmem>>, vector<72x8xbf16>
    %cst = arith.constant dense<0.000000e+00> : vector<64x8xf32>
    %2 = tpu.matmul %0, %1, %cst {dimension_numbers = #tpu.dot_dimension_numbers<[1], [0], [0], [1], [0, 0, 1, 1], [], []>} : vector<64x72xbf16>, vector<72x8xbf16>, vector<64x8xf32> -> vector<64x8xf32>
    %c0_3 = arith.constant 0 : index
    %c0_4 = arith.constant 0 : index
    %3 = vector.load %arg3[%c0_3, %c0_4] : memref<1x8xf32, #tpu.memory_space<vmem>>, vector<1x8xf32>
    %4 = vector.broadcast %3 : vector<1x8xf32> to vector<64x8xf32>
    %5 = arith.addf %2, %4 : vector<64x8xf32>
    %cst_5 = arith.constant 0.000000e+00 : f32
    %6 = vector.broadcast %cst_5 : f32 to vector<64x8xf32>
    %7 = arith.maximumf %5, %6 : vector<64x8xf32>
    %c0_6 = arith.constant 0 : index
    %c0_7 = arith.constant 0 : index
    %8 = vector.load %arg4[%c0_6, %c0_7] : memref<64x8xf32, #tpu.memory_space<vmem>>, vector<64x8xf32>
    %9 = arith.addf %8, %7 : vector<64x8xf32>
    %c0_8 = arith.constant 0 : index
    %c0_9 = arith.constant 0 : index
    %10 = vector.load %arg5[%c0_8, %c0_9] : memref<64x8xf32, #tpu.memory_space<vmem>>, vector<64x8xf32>
    tpu.vector_store %arg5[%c0_8, %c0_9], %9 {strides = array<i32>} : memref<64x8xf32, #tpu.memory_space<vmem>>, vector<64x8xf32>,
    return
  }
  func.func @transform_0(%arg0: i32) -> (i32, i32) {
    %c0_i32 = arith.constant 0 : i32
    %c0_i32_0 = arith.constant 0 : i32
    return %arg0, %c0_i32 : i32, i32
  }
  func.func @transform_1(%arg0: i32) -> (i32, i32) {
    %c0_i32 = arith.constant 0 : i32
    %c0_i32_0 = arith.constant 0 : i32
    %c0_i32_1 = arith.constant 0 : i32
    return %c0_i32, %c0_i32_0 : i32, i32
  }
  func.func @transform_2(%arg0: i32) -> (i32, i32) {
    %c0_i32 = arith.constant 0 : i32
    %c0_i32_0 = arith.constant 0 : i32
    %c0_i32_1 = arith.constant 0 : i32
    return %c0_i32, %c0_i32_0 : i32, i32
  }
  func.func @transform_3(%arg0: i32) -> (i32, i32) {
    %c0_i32 = arith.constant 0 : i32
    %c0_i32_0 = arith.constant 0 : i32
    return %arg0, %c0_i32 : i32, i32
  }
  func.func @transform_4(%arg0: i32) -> (i32, i32) {
    %c0_i32 = arith.constant 0 : i32
    %c0_i32_0 = arith.constant 0 : i32
    return %arg0, %c0_i32 : i32, i32
  }
}

</mosaic_0001>

<bundles_post_ra>
// kernel: skip_block_forward.3
= control target key start
LH: loop header
LB: loop body
LE: loop exit
PB: predicated region body
PF: predicated region fallthrough
CT: control target
= control target key end

     0   :  { %s1174_s24 = smov 0   ;;  %s1258_s0 = inlined_call_operand.vmem [shape: bf16[128,36], index: 0, kind: input, shape index: {}]   ;;  %s1259_s1 = inlined_call_operand.vmem [shape: bf16[128,36], index: 1, kind: input, shape index: {}]   ;;  %s1260_s2 = inlined_call_operand.vmem [shape: bf16[128,36], index: 2, kind: input, shape index: {}]   ;;  %s1261_s3 = inlined_call_operand.vmem [shape: bf16[128,36], index: 3, kind: input, shape index: {}]   ;;  %s1262_s4 = inlined_call_operand.vmem [shape: bf16[36,8], index: 4, kind: input, shape index: {}]   ;;  %s1263_s5 = inlined_call_operand.vmem [shape: f32[1,8], index: 5, kind: input, shape index: {}]   ;;  %s1264_s6 = inlined_call_operand.vmem [shape: f32[1,8], index: 6, kind: input, shape index: {}]   ;;  %s1265_s7 = inlined_call_operand.vmem [shape: f32[128,8], index: 7, kind: output, shape index: {}]  }
   0x1 LB: > { %s957_s25 = sadd.s32 4294967295, %s1132_s24   ;;  %p961_p0 = scmp.ge.s32.totalorder %s1132_s24, 1  ;;  %s1132_s24 = sphi %s1174_s24, %s17_s24  }
   0x2   : > { %p271_p1 = scmp.lt.s32.totalorder %s1132_s24, 3 }
   0x4   : > { %p272_p2 = pnand %p961_p0, %p271_p1 }
   0x5   : > { %v1107_v0 = vld [vmem:[%s1262_s4] sm:$0xff] (!%p272_p2)   ;;  %v1108_v1 = vld [vmem:[%s1262_s4 + $0x8] sm:$0xff] (!%p272_p2)   ;;  %s962_s30 = sshll.u32 (!%p272_p2), %s957_s25, 3  ;;  %v1109_v2 = vld [vmem:[%s1262_s4 + $0x10] ss:$0 sps:$4 sm:$0x33] (!%p272_p2)  }
   0x6   : > { %275 = sbr.rel (%p272_p2) target bundleno = 269 (0x10d), region = 48  ;;  %1039 = vmatprep.subr.bf16.mxu0 (!%p272_p2), %v1107_v0  ;;  %1053 = vmatprep.subr.bf16.mxu1 (!%p272_p2), %v1107_v0  ;;  %p319_p3 = scmp.lt.s32.totalorder (!%p272_p2), %s962_s30, 15  ;;  %vm410_vm0 = vcmask (!%p272_p2), 1041408   ;;  %vm397_vm1 = vcmask (!%p272_p2), 293888   ;;  %v1007_v49 = vld [vmem:[%s1263_s5] ss:$0 sm:$0xff] (!%p272_p2) }
   0x7   : > { %1040 = vmatpush3.bf16.msra.mxu0 (!%p272_p2), %v1107_v0  ;;  %1054 = vmatpush3.bf16.msra.mxu1 (!%p272_p2), %v1107_v0  ;;  %v412_v3 = vsel (!%p272_p2), %vm410_vm0, %v1109_v2, 0  ;;  %v1008_v57 = vld [vmem:[%s1264_s6] ss:$0 sm:$0xff] (!%p272_p2)  ;;  %vm856_vm2 = vcmask (!%p272_p2), 64512  }
   0x8   : > { %1041 = vmatprep.subr.bf16.mxu0 (!%p272_p2), %v1108_v1  ;;  %1055 = vmatprep.subr.bf16.mxu1 (!%p272_p2), %v1108_v1 }
   0xb   : > { %1042 = vmatpush3.bf16.msra.mxu0 (!%p272_p2), %v1108_v1  ;;  %1056 = vmatpush3.bf16.msra.mxu1 (!%p272_p2), %v1108_v1 }
   0xc   : > { %1095 = vmatprep.subr.msk.bf16.mxu0 (!%p272_p2), %vm410_vm0, %v1109_v2  ;;  %1096 = vmatprep.subr.msk.bf16.mxu1 (!%p272_p2), %vm410_vm0, %v1109_v2 }
   0xd   : > { %s1267_s30 = smov (!%p319_p3, %s962_s30), 15 }
   0xe   : > { %s963_s10 = sshll.u32 %s1267_s30, 2  ;;  %s971_s28 = sshll.u32 %s1267_s30, 3 }
   0xf   : > { %s322_s13 = scalar_lea.vmem %s1258_s0, %s963_s10  ;;  %s328_s16 = scalar_lea.vmem %s1259_s1, %s963_s10  ;;  %1044 = vmatpush3.bf16.msra.mxu0 %v412_v3  ;;  %1058 = vmatpush3.bf16.msra.mxu1 %v412_v3 }
  0x10   : > { %v1110_v4 = vld [vmem:[%s322_s13] sm:$0xff]   ;;  %v1112_v6 = vld [vmem:[%s322_s13 + $0x8] sm:$0xff]   ;;  %1067 = vmatprep.subr.bf16.mxu0 %v1107_v0  ;;  %v1114_v8 = vld [vmem:[%s322_s13 + $0x10] sm:$0xff]   ;;  %1081 = vmatprep.subr.bf16.mxu1 %v1107_v0  ;;  %s334_s19 = scalar_lea.vmem %s1260_s2, %s963_s10  ;;  %s340_s22 = scalar_lea.vmem %s1261_s3, %s963_s10 }
  0x11   : > { %v1111_v5 = vld [vmem:[%s328_s16] sm:$0xff]   ;;  %1045 = vmatprep.mubr.msk.bf16.mxu0 %vm397_vm1, %v1110_v4  ;;  %v1113_v7 = vld [vmem:[%s328_s16 + $0x8] sm:$0xff]   ;;  %v1115_v9 = vld [vmem:[%s328_s16 + $0x10] sm:$0xff]   ;;  %s1237_s9 = scalar_lea.vmem %s1265_s7, %s971_s28 }
  0x12   : > { %1059 = vmatprep.mubr.msk.bf16.mxu1 %vm397_vm1, %v1111_v5  ;;  %1046 = vmatmul.mubr.msk.bf16.vlgmr.msra.gmra.mrb[0].mxu0 %vm397_vm1, %v1112_v6  ;;  %v1116_v10 = vld [vmem:[%s322_s13 + $0x18] sm:$0xff]   ;;  %v1118_v12 = vld [vmem:[%s334_s19] sm:$0xff]   ;;  %v1120_v14 = vld [vmem:[%s334_s19 + $0x8] sm:$0xff]  }
  0x13   : > { %1060 = vmatmul.mubr.msk.bf16.vlgmr.msra.gmra.mrb[0].mxu1 %vm397_vm1, %v1113_v7  ;;  %1068 = vmatpush3.bf16.msra.mxu0 %v1107_v0  ;;  %v1117_v11 = vld [vmem:[%s328_s16 + $0x18] sm:$0xff]   ;;  %v1119_v13 = vld [vmem:[%s340_s22] sm:$0xff]   ;;  %v1121_v15 = vld [vmem:[%s340_s22 + $0x8] sm:$0xff]  }
  0x14   : > { %1082 = vmatpush3.bf16.msra.mxu1 %v1107_v0  ;;  %1069 = vmatprep.subr.bf16.mxu0 %v1108_v1  ;;  %v1122_v16 = vld [vmem:[%s334_s19 + $0x10] sm:$0xff]   ;;  %v1124_v18 = vld [vmem:[%s334_s19 + $0x18] sm:$0xff]  }
  0x15   : > { %1083 = vmatprep.subr.bf16.mxu1 %v1108_v1  ;;  %1049 = vmatprep.mubr.msk.bf16.mxu0 %vm397_vm1, %v1114_v8  ;;  %v1123_v17 = vld [vmem:[%s340_s22 + $0x10] sm:$0xff]   ;;  %v1125_v19 = vld [vmem:[%s340_s22 + $0x18] sm:$0xff]  }
  0x16   : > { %1063 = vmatprep.mubr.msk.bf16.mxu1 %vm397_vm1, %v1115_v9 }
  0x17   : > { %1070 = vmatpush3.bf16.msra.mxu0 %v1108_v1 }
  0x18   : > { %1084 = vmatpush3.bf16.msra.mxu1 %v1108_v1  ;;  %1097 = vmatprep.subr.msk.bf16.mxu0 %vm410_vm0, %v1109_v2 }
  0x19   : > { %1098 = vmatprep.subr.msk.bf16.mxu1 %vm410_vm0, %v1109_v2 }
  0x1a   : > { %1050 = vmatmul.mubr.msk.bf16.gmra.mrb[4].mxu0 %vm397_vm1, %v1116_v10 }
  0x1b   : > { %1064 = vmatmul.mubr.msk.bf16.gmra.mrb[4].mxu1 %vm397_vm1, %v1117_v11  ;;  %1072 = vmatpush3.bf16.msra.mxu0 %v412_v3 }
  0x1c   : > { %1086 = vmatpush3.bf16.msra.mxu1 %v412_v3  ;;  %1073 = vmatprep.mubr.msk.bf16.mxu0 %vm397_vm1, %v1118_v12 }
  0x1d   : > { %1087 = vmatprep.mubr.msk.bf16.mxu1 %vm397_vm1, %v1119_v13 }
  0x22   : > { %1074 = vmatmul.mubr.msk.bf16.vlgmr.msra.gmra.mrb[8].mxu0 %vm397_vm1, %v1120_v14 }
  0x23   : > { %1088 = vmatmul.mubr.msk.bf16.vlgmr.msra.gmra.mrb[8].mxu1 %vm397_vm1, %v1121_v15  ;;  %1077 = vmatprep.mubr.msk.bf16.mxu0 %vm397_vm1, %v1122_v16 }
  0x24   : > { %1091 = vmatprep.mubr.msk.bf16.mxu1 %vm397_vm1, %v1123_v17 }
  0x2a   : > { %1078 = vmatmul.mubr.msk.bf16.gmra.mrb[12].mxu0 %vm397_vm1, %v1124_v18 }
  0x2b   : > { %1092 = vmatmul.mubr.msk.bf16.gmra.mrb[12].mxu1 %vm397_vm1, %v1125_v19 }
  0xe5   : > { %v1047_v20 = vpop.f32.mrb[0].mxu0 }
  0xe6   : > { %v1061_v21 = vpop.f32.mrb[0].mxu1  ;;  %v448_v23 = vpop.f32.mrb[1].mxu0 }
  0xe7   : > { %v796_v22 = vmax.f32 %v1047_v20, %v1061_v21  ;;  %v553_v24 = vpop.f32.mrb[1].mxu1  ;;  %v1048_v26 = vpop.f32.mrb[2].mxu0 }
  0xe8   : > { %v794_v25 = vmax.f32 %v448_v23, %v553_v24  ;;  %v1062_v27 = vpop.f32.mrb[2].mxu1  ;;  %v451_v29 = vpop.f32.mrb[3].mxu0 }
  0xe9   : > { %v797_v28 = vmax.f32 %v1048_v26, %v1062_v27  ;;  %v556_v30 = vpop.f32.mrb[3].mxu1 }
  0xea   : > { %v795_v31 = vmax.f32 %v451_v29, %v556_v30 }
  0xed   : > { %v1051_v32 = vpop.f32.mrb[4].mxu0 }
  0xee   : > { %v1065_v33 = vpop.f32.mrb[4].mxu1  ;;  %v464_v35 = vpop.f32.mrb[5].mxu0 }
  0xef   : > { %v800_v34 = vmax.f32 %v1051_v32, %v1065_v33  ;;  %v569_v36 = vpop.f32.mrb[5].mxu1  ;;  %v1052_v38 = vpop.f32.mrb[6].mxu0 }
  0xf0   : > { %v798_v37 = vmax.f32 %v464_v35, %v569_v36  ;;  %v1066_v39 = vpop.f32.mrb[6].mxu1  ;;  %v467_v41 = vpop.f32.mrb[7].mxu0 }
  0xf1   : > { %v801_v40 = vmax.f32 %v1052_v38, %v1066_v39  ;;  %v572_v42 = vpop.f32.mrb[7].mxu1 }
  0xf2   : > { %v799_v43 = vmax.f32 %v467_v41, %v572_v42 }
  0xf5   : > { %v1075_v44 = vpop.f32.mrb[8].mxu0 }
  0xf6   : > { %v1089_v45 = vpop.f32.mrb[8].mxu1  ;;  %v658_v47 = vpop.f32.mrb[9].mxu0 }
  0xf7   : > { %v804_v46 = vmax.f32 %v1075_v44, %v1089_v45  ;;  %v763_v48 = vpop.f32.mrb[9].mxu1  ;;  %v1076_v51 = vpop.f32.mrb[10].mxu0 }
  0xf8   : > { %v802_v50 = vmax.f32 %v658_v47, %v763_v48  ;;  %v1090_v52 = vpop.f32.mrb[10].mxu1  ;;  %v661_v55 = vpop.f32.mrb[11].mxu0 }
  0xf9   : > { %v812_v53 = vmax.f32 %v796_v22, %v804_v46  ;;  %v805_v54 = vmax.f32 %v1076_v51, %v1090_v52  ;;  %v766_v56 = vpop.f32.mrb[11].mxu1 }
  0xfa   : > { %v810_v58 = vmax.f32 %v794_v25, %v802_v50  ;;  %v803_v59 = vmax.f32 %v661_v55, %v766_v56 }
  0xfb   : > { %v827_v60 = vmul.f32 %v1007_v49, %v812_v53  ;;  %v813_v61 = vmax.f32 %v797_v28, %v805_v54 }
  0xfc   : > { %v825_v62 = vmul.f32 %v1007_v49, %v810_v58  ;;  %v811_v63 = vmax.f32 %v795_v31, %v803_v59 }
  0xfd   : > { %v842_v0 = vadd.f32 %v1008_v57, %v827_v60  ;;  %v828_v1 = vmul.f32 %v1007_v49, %v813_v61  ;;  %v1079_v4 = vpop.f32.mrb[12].mxu0 }
  0xfe   : > { %v840_v2 = vadd.f32 %v1008_v57, %v825_v62  ;;  %v826_v3 = vmul.f32 %v1007_v49, %v811_v63  ;;  %v1093_v5 = vpop.f32.mrb[12].mxu1  ;;  %v674_v9 = vpop.f32.mrb[13].mxu0 }
  0xff   : > { %v850_v6 = vmax.f32 %v842_v0, 0.0  ;;  %v843_v7 = vadd.f32 %v1008_v57, %v828_v1  ;;  %v808_v8 = vmax.f32 %v1079_v4, %v1093_v5  ;;  %v779_v10 = vpop.f32.mrb[13].mxu1  ;;  %v1080_v14 = vpop.f32.mrb[14].mxu0 }
 0x100   : > { %v848_v11 = vmax.f32 %v840_v2, 0.0  ;;  %v841_v12 = vadd.f32 %v1008_v57, %v826_v3  ;;  %v806_v13 = vmax.f32 %v674_v9, %v779_v10  ;;  %v1094_v15 = vpop.f32.mrb[14].mxu1  ;;  %v677_v19 = vpop.f32.mrb[15].mxu0 }
 0x101   : > { %859 = vst.msk [vmem:[%s1237_s9 + $0x10] sm:$0xff] %vm856_vm2, %v850_v6  ;;  %v851_v16 = vmax.f32 %v843_v7, 0.0  ;;  %v816_v17 = vmax.f32 %v800_v34, %v808_v8  ;;  %v809_v18 = vmax.f32 %v1080_v14, %v1094_v15  ;;  %v782_v20 = vpop.f32.mrb[15].mxu1 }
 0x102   : > { %857 = vst.msk [vmem:[%s1237_s9] sm:$0xff] %vm856_vm2, %v848_v11  ;;  %v849_v21 = vmax.f32 %v841_v12, 0.0  ;;  %v814_v22 = vmax.f32 %v798_v37, %v806_v13  ;;  %v807_v23 = vmax.f32 %v677_v19, %v782_v20 }
 0x103   : > { %860 = vst.msk [vmem:[%s1237_s9 + $0x18] sm:$0xff] %vm856_vm2, %v851_v16  ;;  %v831_v24 = vmul.f32 %v1007_v49, %v816_v17  ;;  %v817_v25 = vmax.f32 %v801_v40, %v809_v18 }
 0x104   : > { %858 = vst.msk [vmem:[%s1237_s9 + $0x8] sm:$0xff] %vm856_vm2, %v849_v21  ;;  %v829_v26 = vmul.f32 %v1007_v49, %v814_v22  ;;  %v815_v27 = vmax.f32 %v799_v43, %v807_v23 }
 0x105   : > { %v846_v28 = vadd.f32 %v1008_v57, %v831_v24  ;;  %v832_v29 = vmul.f32 %v1007_v49, %v817_v25 }
 0x106   : > { %v844_v30 = vadd.f32 %v1008_v57, %v829_v26  ;;  %v830_v31 = vmul.f32 %v1007_v49, %v815_v27 }
 0x107   : > { %v854_v32 = vmax.f32 %v846_v28, 0.0  ;;  %v847_v33 = vadd.f32 %v1008_v57, %v832_v29 }
 0x108   : > { %v852_v34 = vmax.f32 %v844_v30, 0.0  ;;  %v845_v35 = vadd.f32 %v1008_v57, %v830_v31 }
 0x109   : > { %863 = vst.msk [vmem:[%s1237_s9 + $0x30] sm:$0xff] %vm856_vm2, %v854_v32  ;;  %v855_v36 = vmax.f32 %v847_v33, 0.0 }
 0x10a   : > { %861 = vst.msk [vmem:[%s1237_s9 + $0x20] sm:$0xff] %vm856_vm2, %v852_v34  ;;  %v853_v37 = vmax.f32 %v845_v35, 0.0 }
 0x10b   : > { %864 = vst.msk [vmem:[%s1237_s9 + $0x38] sm:$0xff] %vm856_vm2, %v855_v36 }
 0x10c   : > { %862 = vst.msk [vmem:[%s1237_s9 + $0x28] sm:$0xff] %vm856_vm2, %v853_v37 }
 0x10d PF: > { %s17_s24 = sadd.s32 1, %s1132_s24  }
 0x10e   : > { %p14_p4 = scmp.ge.s32.totalorder %s17_s24, 4  }
 0x110   :  { %16 = sbr.rel (!%p14_p4) target bundleno = 1 (0x1), region = 87 }

// kernel: skip_block_forward.4
= control target key start
LH: loop header
LB: loop body
LE: loop exit
PB: predicated region body
PF: predicated region fallthrough
CT: control target
= control target key end

     0   :  { %s558_s12 = smov 0   ;;  %s612_s0 = inlined_call_operand.vmem [shape: bf16[128,72], index: 0, kind: input, shape index: {}]   ;;  %s613_s1 = inlined_call_operand.vmem [shape: bf16[72,8], index: 1, kind: input, shape index: {}]   ;;  %s614_s2 = inlined_call_operand.vmem [shape: f32[1,8], index: 2, kind: input, shape index: {}]   ;;  %s615_s3 = inlined_call_operand.vmem [shape: bf16[128,8], index: 3, kind: output, shape index: {}]  }
   0x1 LB: > { %s433_s13 = sadd.s32 4294967295, %s536_s12   ;;  %p437_p0 = scmp.ge.s32.totalorder %s536_s12, 1  ;;  %s536_s12 = sphi %s558_s12, %s13_s12  }
   0x2   : > { %p138_p1 = scmp.lt.s32.totalorder %s536_s12, 3 }
   0x4   : > { %p139_p2 = pnand %p437_p0, %p138_p1 }
   0x5   : > { %v521_v0 = vld [vmem:[%s613_s1] sm:$0xff] (!%p139_p2)   ;;  %v522_v1 = vld [vmem:[%s613_s1 + $0x8] sm:$0xff] (!%p139_p2)   ;;  %s438_s18 = sshll.u32 (!%p139_p2), %s433_s13, 3  ;;  %v523_v2 = vld [vmem:[%s613_s1 + $0x10] sm:$0xff] (!%p139_p2)   ;;  %vm246_vm0 = vcmask (!%p139_p2), 588800   ;;  %vm259_vm1 = vcmask (!%p139_p2), 1043456  }
   0x6   : > { %142 = sbr.rel (%p139_p2) target bundleno = 248 (0xf8), region = 32  ;;  %483 = vmatprep.subr.bf16.mxu0 (!%p139_p2), %v521_v0  ;;  %501 = vmatprep.subr.bf16.mxu1 (!%p139_p2), %v521_v0  ;;  %p163_p3 = scmp.lt.s32.totalorder (!%p139_p2), %s438_s18, 15  ;;  %v524_v3 = vld [vmem:[%s613_s1 + $0x18] sm:$0xff] (!%p139_p2)   ;;  %v525_v6 = vld [vmem:[%s613_s1 + $0x20] ss:$0 sps:$4 sm:$0xff] (!%p139_p2)   ;;  %vm368_vm2 = vcmask (!%p139_p2), 60416  }
   0x7   : > { %484 = vmatpush3.bf16.msra.mxu0 (!%p139_p2), %v521_v0  ;;  %506 = vmatpush3.bf16.msra.mxu1 (!%p139_p2), %v521_v0  ;;  %v261_v7 = vsel (!%p139_p2), %vm259_vm1, %v525_v6, 0  ;;  %v442_v10 = vld [vmem:[%s614_s2] ss:$0 sm:$0xff] (!%p139_p2) }
   0x8   : > { %485 = vmatprep.subr.bf16.mxu0 (!%p139_p2), %v522_v1  ;;  %502 = vmatprep.subr.bf16.mxu1 (!%p139_p2), %v522_v1 }
   0xb   : > { %486 = vmatpush3.bf16.msra.mxu0 (!%p139_p2), %v522_v1  ;;  %507 = vmatpush3.bf16.msra.mxu1 (!%p139_p2), %v522_v1 }
   0xc   : > { %487 = vmatprep.subr.bf16.mxu0 (!%p139_p2), %v523_v2  ;;  %503 = vmatprep.subr.bf16.mxu1 (!%p139_p2), %v523_v2 }
   0xd   : > { %s617_s18 = smov (!%p163_p3, %s438_s18), 15 }
   0xe   : > { %s439_s21 = sshll.u32 %s617_s18, 2 }
   0xf   : > { %s166_s26 = scalar_lea.vmem %s612_s0, %s439_s21  ;;  %488 = vmatpush3.bf16.msra.mxu0 %v523_v2  ;;  %508 = vmatpush3.bf16.msra.mxu1 %v523_v2  ;;  %s172_s6 = scalar_lea.vmem %s615_s3, %s439_s21 }
  0x10   : > { %v526_v4 = vld [vmem:[%s166_s26] sm:$0xff]   ;;  %v527_v5 = vld [vmem:[%s166_s26 + $0x10] sm:$0xff]   ;;  %489 = vmatprep.subr.bf16.mxu0 %v524_v3  ;;  %504 = vmatprep.subr.bf16.mxu1 %v524_v3  ;;  %v528_v8 = vld [vmem:[%s166_s26 + $0x8] sm:$0xff]  }
  0x11   : > { %493 = vmatprep.mubr.msk.bf16.mxu0 %vm246_vm0, %v526_v4  ;;  %497 = vmatprep.mubr.msk.bf16.mxu1 %vm246_vm0, %v527_v5  ;;  %v529_v9 = vld [vmem:[%s166_s26 + $0x18] sm:$0xff]  }
  0x13   : > { %490 = vmatpush3.bf16.msra.mxu0 %v524_v3  ;;  %509 = vmatpush3.bf16.msra.mxu1 %v524_v3 }
  0x14   : > { %511 = vmatprep.subr.msk.bf16.mxu0 %vm259_vm1, %v525_v6  ;;  %512 = vmatprep.subr.msk.bf16.mxu1 %vm259_vm1, %v525_v6 }
  0x17   : > { %492 = vmatpush3.bf16.msra.mxu0 %v261_v7  ;;  %510 = vmatpush3.bf16.msra.mxu1 %v261_v7 }
  0x1a   : > { %494 = vmatmul.mubr.msk.bf16.vlgmr.msra.gmra.mrb[0].mxu0 %vm246_vm0, %v528_v8  ;;  %498 = vmatmul.mubr.msk.bf16.vlgmr.msra.gmra.mrb[0].mxu1 %vm246_vm0, %v529_v9 }
  0xed   : > { %v495_v11 = vpop.f32.mrb[0].mxu0  ;;  %v499_v12 = vpop.f32.mrb[0].mxu1 }
  0xee   : > { %v306_v13 = vadd.f32 %v495_v11, %v442_v10  ;;  %v322_v14 = vadd.f32 %v499_v12, %v442_v10  ;;  %v297_v15 = vpop.f32.mrb[1].mxu0  ;;  %v313_v16 = vpop.f32.mrb[1].mxu1 }
  0xef   : > { %v298_v17 = vadd.f32 %v442_v10, %v297_v15  ;;  %v314_v18 = vadd.f32 %v442_v10, %v313_v16  ;;  %v496_v19 = vpop.f32.mrb[2].mxu0  ;;  %v500_v20 = vpop.f32.mrb[2].mxu1 }
  0xf0   : > { %v330_v21 = vmax.f32 %v306_v13, 0.0  ;;  %v334_v22 = vmax.f32 %v322_v14, 0.0  ;;  %v309_v23 = vadd.f32 %v496_v19, %v442_v10  ;;  %v325_v24 = vadd.f32 %v500_v20, %v442_v10  ;;  %v300_v25 = vpop.f32.mrb[3].mxu0  ;;  %v316_v26 = vpop.f32.mrb[3].mxu1 }
  0xf1   : > { %v328_v27 = vmax.f32 %v298_v17, 0.0  ;;  %v332_v28 = vmax.f32 %v314_v18, 0.0  ;;  %v301_v29 = vadd.f32 %v442_v10, %v300_v25  ;;  %v317_v30 = vadd.f32 %v442_v10, %v316_v26 }
  0xf2   : > { %v468_v31 = vpack.c.bf16 %v330_v21, %v330_v21  ;;  %v472_v32 = vpack.c.bf16 %v334_v22, %v334_v22  ;;  %v331_v33 = vmax.f32 %v309_v23, 0.0  ;;  %v335_v34 = vmax.f32 %v325_v24, 0.0 }
  0xf3   : > { %v466_v35 = vpack.c.bf16 %v328_v27, %v328_v27  ;;  %v470_v36 = vpack.c.bf16 %v332_v28, %v332_v28  ;;  %v329_v37 = vmax.f32 %v301_v29, 0.0  ;;  %v333_v38 = vmax.f32 %v317_v30, 0.0 }
  0xf4   : > { %371 = vst.msk [vmem:[%s172_s6 + $0x8] sm:$0xf] %vm368_vm2, %v468_v31  ;;  %375 = vst.msk [vmem:[%s172_s6 + $0x18] sm:$0xf] %vm368_vm2, %v472_v32  ;;  %v469_v39 = vpack.c.bf16 %v331_v33, %v331_v33  ;;  %v473_v40 = vpack.c.bf16 %v335_v34, %v335_v34 }
  0xf5   : > { %369 = vst.msk [vmem:[%s172_s6] sm:$0xf] %vm368_vm2, %v466_v35  ;;  %373 = vst.msk [vmem:[%s172_s6 + $0x10] sm:$0xf] %vm368_vm2, %v470_v36  ;;  %v467_v41 = vpack.c.bf16 %v329_v37, %v329_v37  ;;  %v471_v42 = vpack.c.bf16 %v333_v38, %v333_v38 }
  0xf6   : > { %372 = vst.msk [vmem:[%s172_s6 + $0xc] sm:$0xf] %vm368_vm2, %v469_v39  ;;  %376 = vst.msk [vmem:[%s172_s6 + $0x1c] sm:$0xf] %vm368_vm2, %v473_v40 }
  0xf7   : > { %370 = vst.msk [vmem:[%s172_s6 + $0x4] sm:$0xf] %vm368_vm2, %v467_v41  ;;  %374 = vst.msk [vmem:[%s172_s6 + $0x14] sm:$0xf] %vm368_vm2, %v471_v42 }
  0xf8 PF: > { %s13_s12 = sadd.s32 1, %s536_s12  }
  0xf9   : > { %p10_p4 = scmp.ge.s32.totalorder %s13_s12, 4  }
  0xfb   :  { %12 = sbr.rel (!%p10_p4) target bundleno = 1 (0x1), region = 62 }

// kernel: skip_block_forward.5
= control target key start
LH: loop header
LB: loop body
LE: loop exit
PB: predicated region body
PF: predicated region fallthrough
CT: control target
= control target key end

     0   :  { %s594_s15 = smov 0   ;;  %s648_s0 = inlined_call_operand.vmem [shape: bf16[128,72], index: 0, kind: input, shape index: {}]   ;;  %s649_s1 = inlined_call_operand.vmem [shape: bf16[72,8], index: 1, kind: input, shape index: {}]   ;;  %s650_s2 = inlined_call_operand.vmem [shape: f32[1,8], index: 2, kind: input, shape index: {}]   ;;  %s651_s3 = inlined_call_operand.vmem [shape: f32[128,8], index: 3, kind: input, shape index: {}, may-alias: {3,4}]   ;;  %s652_s4 = inlined_call_operand.vmem [shape: f32[128,8], index: 4, kind: output, shape index: {}, may-alias: {3,4}]  }
   0x1 LB: > { %s478_s16 = sadd.s32 4294967295, %s567_s15   ;;  %p482_p0 = scmp.ge.s32.totalorder %s567_s15, 1  ;;  %s567_s15 = sphi %s594_s15, %s14_s15  }
   0x2   : > { %p174_p1 = scmp.lt.s32.totalorder %s567_s15, 3 }
   0x4   : > { %p175_p2 = pnand %p482_p0, %p174_p1 }
   0x5   : > { %v552_v0 = vld [vmem:[%s649_s1] sm:$0xff] (!%p175_p2)   ;;  %v553_v1 = vld [vmem:[%s649_s1 + $0x8] sm:$0xff] (!%p175_p2)   ;;  %s483_s21 = sshll.u32 (!%p175_p2), %s478_s16, 3  ;;  %v554_v2 = vld [vmem:[%s649_s1 + $0x10] sm:$0xff] (!%p175_p2)   ;;  %vm295_vm0 = vcmask (!%p175_p2), 588800   ;;  %vm308_vm1 = vcmask (!%p175_p2), 1043456  }
   0x6   : > { %178 = sbr.rel (%p175_p2) target bundleno = 248 (0xf8), region = 36  ;;  %514 = vmatprep.subr.bf16.mxu0 (!%p175_p2), %v552_v0  ;;  %532 = vmatprep.subr.bf16.mxu1 (!%p175_p2), %v552_v0  ;;  %p206_p3 = scmp.lt.s32.totalorder (!%p175_p2), %s483_s21, 15  ;;  %v555_v3 = vld [vmem:[%s649_s1 + $0x18] sm:$0xff] (!%p175_p2)   ;;  %v556_v6 = vld [vmem:[%s649_s1 + $0x20] ss:$0 sps:$4 sm:$0xff] (!%p175_p2)   ;;  %vm401_vm2 = vcmask (!%p175_p2), 64512  }
   0x7   : > { %515 = vmatpush3.bf16.msra.mxu0 (!%p175_p2), %v552_v0  ;;  %537 = vmatpush3.bf16.msra.mxu1 (!%p175_p2), %v552_v0  ;;  %v310_v7 = vsel (!%p175_p2), %vm308_vm1, %v556_v6, 0  ;;  %v489_v10 = vld [vmem:[%s650_s2] ss:$0 sm:$0xff] (!%p175_p2) }
   0x8   : > { %516 = vmatprep.subr.bf16.mxu0 (!%p175_p2), %v553_v1  ;;  %533 = vmatprep.subr.bf16.mxu1 (!%p175_p2), %v553_v1 }
   0xb   : > { %517 = vmatpush3.bf16.msra.mxu0 (!%p175_p2), %v553_v1  ;;  %538 = vmatpush3.bf16.msra.mxu1 (!%p175_p2), %v553_v1 }
   0xc   : > { %518 = vmatprep.subr.bf16.mxu0 (!%p175_p2), %v554_v2  ;;  %534 = vmatprep.subr.bf16.mxu1 (!%p175_p2), %v554_v2 }
   0xd   : > { %s654_s21 = smov (!%p206_p3, %s483_s21), 15 }
   0xe   : > { %s484_s24 = sshll.u32 %s654_s21, 2  ;;  %s486_s6 = sshll.u32 %s654_s21, 3 }
   0xf   : > { %s209_s29 = scalar_lea.vmem %s648_s0, %s484_s24  ;;  %519 = vmatpush3.bf16.msra.mxu0 %v554_v2  ;;  %539 = vmatpush3.bf16.msra.mxu1 %v554_v2  ;;  %s215_s11 = scalar_lea.vmem %s651_s3, %s486_s6 }
  0x10   : > { %v557_v4 = vld [vmem:[%s209_s29] sm:$0xff]   ;;  %v558_v5 = vld [vmem:[%s209_s29 + $0x10] sm:$0xff]   ;;  %520 = vmatprep.subr.bf16.mxu0 %v555_v3  ;;  %535 = vmatprep.subr.bf16.mxu1 %v555_v3  ;;  %v559_v8 = vld [vmem:[%s209_s29 + $0x8] sm:$0xff]   ;;  %s221_s14 = scalar_lea.vmem %s652_s4, %s486_s6 }
  0x11   : > { %524 = vmatprep.mubr.msk.bf16.mxu0 %vm295_vm0, %v557_v4  ;;  %528 = vmatprep.mubr.msk.bf16.mxu1 %vm295_vm0, %v558_v5  ;;  %v560_v9 = vld [vmem:[%s209_s29 + $0x18] sm:$0xff]   ;;  %v387_v17 = vld [vmem:[%s215_s11 + $0x10] sm:$0xff]  ;;  %v385_v20 = vld [vmem:[%s215_s11] sm:$0xff] }
  0x12   : > { %v391_v18 = vld [vmem:[%s215_s11 + $0x30] sm:$0xff]  ;;  %v389_v26 = vld [vmem:[%s215_s11 + $0x20] sm:$0xff]  ;;  %v388_v28 = vld [vmem:[%s215_s11 + $0x18] sm:$0xff] }
  0x13   : > { %521 = vmatpush3.bf16.msra.mxu0 %v555_v3  ;;  %540 = vmatpush3.bf16.msra.mxu1 %v555_v3  ;;  %v392_v34 = vld [vmem:[%s215_s11 + $0x38] sm:$0xff]  ;;  %v386_v36 = vld [vmem:[%s215_s11 + $0x8] sm:$0xff] }
  0x14   : > { %542 = vmatprep.subr.msk.bf16.mxu0 %vm308_vm1, %v556_v6  ;;  %543 = vmatprep.subr.msk.bf16.mxu1 %vm308_vm1, %v556_v6  ;;  %v390_v38 = vld [vmem:[%s215_s11 + $0x28] sm:$0xff] }
  0x17   : > { %523 = vmatpush3.bf16.msra.mxu0 %v310_v7  ;;  %541 = vmatpush3.bf16.msra.mxu1 %v310_v7 }
  0x1a   : > { %525 = vmatmul.mubr.msk.bf16.vlgmr.msra.gmra.mrb[0].mxu0 %vm295_vm0, %v559_v8  ;;  %529 = vmatmul.mubr.msk.bf16.vlgmr.msra.gmra.mrb[0].mxu1 %vm295_vm0, %v560_v9 }
  0xed   : > { %v526_v11 = vpop.f32.mrb[0].mxu0  ;;  %v530_v12 = vpop.f32.mrb[0].mxu1 }
  0xee   : > { %v355_v13 = vadd.f32 %v526_v11, %v489_v10  ;;  %v371_v14 = vadd.f32 %v530_v12, %v489_v10  ;;  %v346_v15 = vpop.f32.mrb[1].mxu0  ;;  %v362_v16 = vpop.f32.mrb[1].mxu1 }
  0xef   : > { %v347_v19 = vadd.f32 %v489_v10, %v346_v15  ;;  %v363_v21 = vadd.f32 %v489_v10, %v362_v16  ;;  %v527_v22 = vpop.f32.mrb[2].mxu0  ;;  %v531_v23 = vpop.f32.mrb[2].mxu1 }
  0xf0   : > { %v379_v24 = vmax.f32 %v355_v13, 0.0  ;;  %v383_v25 = vmax.f32 %v371_v14, 0.0  ;;  %v358_v27 = vadd.f32 %v527_v22, %v489_v10  ;;  %v374_v29 = vadd.f32 %v531_v23, %v489_v10  ;;  %v349_v30 = vpop.f32.mrb[3].mxu0  ;;  %v365_v31 = vpop.f32.mrb[3].mxu1 }
  0xf1   : > { %v377_v32 = vmax.f32 %v347_v19, 0.0  ;;  %v381_v33 = vmax.f32 %v363_v21, 0.0  ;;  %v350_v35 = vadd.f32 %v489_v10, %v349_v30  ;;  %v366_v37 = vadd.f32 %v489_v10, %v365_v31 }
  0xf2   : > { %v395_v39 = vadd.f32 %v387_v17, %v379_v24  ;;  %v399_v40 = vadd.f32 %v391_v18, %v383_v25  ;;  %v380_v41 = vmax.f32 %v358_v27, 0.0  ;;  %v384_v42 = vmax.f32 %v374_v29, 0.0 }
  0xf3   : > { %v393_v43 = vadd.f32 %v385_v20, %v377_v32  ;;  %v397_v44 = vadd.f32 %v389_v26, %v381_v33  ;;  %v378_v45 = vmax.f32 %v350_v35, 0.0  ;;  %v382_v46 = vmax.f32 %v366_v37, 0.0 }
  0xf4   : > { %v396_v47 = vadd.f32 %v388_v28, %v380_v41  ;;  %v400_v48 = vadd.f32 %v392_v34, %v384_v42  ;;  %404 = vst.msk [vmem:[%s221_s14 + $0x10] sm:$0xff] %vm401_vm2, %v395_v39  ;;  %408 = vst.msk [vmem:[%s221_s14 + $0x30] sm:$0xff] %vm401_vm2, %v399_v40 }
  0xf5   : > { %v394_v49 = vadd.f32 %v386_v36, %v378_v45  ;;  %v398_v50 = vadd.f32 %v390_v38, %v382_v46  ;;  %402 = vst.msk [vmem:[%s221_s14] sm:$0xff] %vm401_vm2, %v393_v43  ;;  %406 = vst.msk [vmem:[%s221_s14 + $0x20] sm:$0xff] %vm401_vm2, %v397_v44 }
  0xf6   : > { %405 = vst.msk [vmem:[%s221_s14 + $0x18] sm:$0xff] %vm401_vm2, %v396_v47  ;;  %409 = vst.msk [vmem:[%s221_s14 + $0x38] sm:$0xff] %vm401_vm2, %v400_v48 }
  0xf7   : > { %403 = vst.msk [vmem:[%s221_s14 + $0x8] sm:$0xff] %vm401_vm2, %v394_v49  ;;  %407 = vst.msk [vmem:[%s221_s14 + $0x28] sm:$0xff] %vm401_vm2, %v398_v50 }
  0xf8 PF: > { %s14_s15 = sadd.s32 1, %s567_s15  }
  0xf9   : > { %p11_p4 = scmp.ge.s32.totalorder %s14_s15, 4  }
  0xfb   :  { %13 = sbr.rel (!%p11_p4) target bundleno = 1 (0x1), region = 69 }

</bundles_post_ra>
